<compile_context>
chip_gen: v6e
topology: v6e:2x2x1
jax: 0.10.0
libtpu: 0.0.40
codegen_flags: <defaults>
</compile_context>

<pallas_src>
import functools
import numpy as np
import jax
import jax.numpy as jnp
from jax.experimental import pallas as pl
from jax.experimental.pallas import tpu as pltpu


def _round_up(x: int, m: int) -> int:
    return (x + m - 1) // m * m


def _cdiv(a: int, b: int) -> int:
    return (a + b - 1) // b


def _conv_relu_kernel(x_ref, xh_ref, w_ref, b_ref, o_ref, *, taps, stack):
    # x_ref : (1, Cin_p, tile)    main flat-spatial tile (channel-major)
    # xh_ref: (1, Cin_p, t_halo)  halo: the lanes just past this tile
    # w_ref : (Cout_p, K*K*Cin_p) if stack else (K*K, Cout_p, Cin_p)
    # b_ref : (Cout_p, 1)         bias (zeros if use_bias=False)
    # o_ref : (1, Cout_p, tile)   flat output tile (padded-width coordinates)
    x = x_ref[0]                                  # (Cin_p, tile)
    xh = xh_ref[0]                                # (Cin_p, t_halo)
    tile = x.shape[1]

    def shifted(off):                             # lanes [off, off+tile) of [x | xh]
        if off == 0:
            return x
        if off >= tile:                           # only possible when t_halo == tile
            return xh[:, off - tile:off]
        return jnp.concatenate([x[:, off:], xh[:, :off]], axis=1)

    if stack:
        # im2col: stack the K*K shifted slices along the contraction dim -> one dot.
        if len(taps) == 1:
            rhs = shifted(taps[0])
        else:
            rhs = jnp.concatenate([shifted(off) for off in taps], axis=0)
        y = jnp.dot(w_ref[...], rhs, preferred_element_type=jnp.float32)
        y = y + b_ref[...]                        # broadcast (Cout_p, 1)
    else:
        # Per-tap 1x1 matmuls; bias folded into the first accumulate (no extra pass).
        y = b_ref[...] + jnp.dot(w_ref[0], shifted(taps[0]),
                                 preferred_element_type=jnp.float32)
        for t in range(1, len(taps)):             # static unroll
            y = y + jnp.dot(w_ref[t], shifted(taps[t]),
                            preferred_element_type=jnp.float32)

    o_ref[0] = jnp.maximum(y, 0.0).astype(o_ref.dtype)   # fused ReLU


def conv_relu(x, weight, bias=None, *, padding='same', strides=(1, 1),
              dilation_rate=1, stack_taps=None):
    """Forward pass of `conv_relu`: ReLU(Conv2d(x)).

    x:      (N, Cin, H, W)   float32 (NCHW, same as PyTorch)
    weight: (Cout, Cin, K, K) float32 (PyTorch OIHW layout)
    bias:   (Cout,) float32 or None
    """
    n, cin, h, w = x.shape
    cout, cin_w, k0, k1 = weight.shape
    assert cin == cin_w and k0 == k1, "square kernel, matching channels"
    k = k0
    d = int(dilation_rate)
    stride = strides[0] if isinstance(strides, (tuple, list)) else int(strides)

    # Padding matching the module's Conv2d configuration table.
    pad = d if (padding == 'same' and k == 3) else 0
    hp, wp = h + 2 * pad, w + 2 * pad
    h_out1 = hp - d * (k - 1)            # stride-1 output height
    w_out1 = wp - d * (k - 1)            # stride-1 output width

    cin_p = _round_up(cin, 8)
    cout_p = _round_up(cout, 8)
    if stack_taps is None:
        stack_taps = cin_p < 128          # raise MXU contraction only when shallow

    # Flat-offset trick: output flat index j (padded-width coords) reads input
    # flat index j + kh*d*Wp + kw*d for tap (kh, kw).
    taps = tuple(ih * d * wp + iw * d for ih in range(k) for iw in range(k))
    max_off = taps[-1]

    # --- spatial tile sizing (flat axis, lane-dense, bounded VMEM) ---
    t_halo = max(128, _round_up(max_off, 128))           # halo block, divides tile
    l_out = h_out1 * wp                                   # useful flat output length
    tile = t_halo * max(1, 1024 // t_halo)                # target ~1024 lanes
    tile = max(t_halo, min(tile, _round_up(l_out, t_halo)))
    num_tiles = _cdiv(l_out, tile)
    out_len = num_tiles * tile
    in_len = out_len + t_halo            # last tile's halo block must be in bounds

    # Channel pad + spatial 'same' halo, flatten, zero-pad the flat tail so every
    # tap read of every tile stays in bounds (tail reads only feed junk columns /
    # junk rows that are sliced away below).
    # TODO(synk): avoid this jnp.pad HBM pass by zero-filling the halo in-kernel
    #             from the unpadded input once inputs get large.
    x_pad = jnp.pad(x.astype(jnp.float32),
                    ((0, 0), (0, cin_p - cin), (pad, pad), (pad, pad)))
    x_flat = x_pad.reshape(n, cin_p, hp * wp)
    x_flat = jnp.pad(x_flat, ((0, 0), (0, 0), (0, in_len - hp * wp)))

    # Weight reorg (tiny, one-time).
    w_p = jnp.pad(weight.astype(jnp.float32),
                  ((0, cout_p - cout), (0, cin_p - cin), (0, 0), (0, 0)))
    if stack_taps:
        # (Cout_p, K*K*Cin_p): columns ordered [tap0 | tap1 | ...] to match the rhs.
        w_kern = jnp.transpose(w_p, (0, 2, 3, 1)).reshape(cout_p, k * k * cin_p)
        w_spec = pl.BlockSpec((cout_p, k * k * cin_p), lambda b, t: (0, 0))
    else:
        # Per-tap 1x1 weights: (K*K, Cout_p, Cin_p).
        w_kern = jnp.transpose(w_p, (2, 3, 0, 1)).reshape(k * k, cout_p, cin_p)
        w_spec = pl.BlockSpec((k * k, cout_p, cin_p), lambda b, t: (0, 0, 0))

    if bias is None:
        b = jnp.zeros((cout_p, 1), jnp.float32)
    else:
        b = jnp.pad(jnp.asarray(bias, jnp.float32),
                    (0, cout_p - cout)).reshape(cout_p, 1)

    halo_step = tile // t_halo
    kernel = functools.partial(_conv_relu_kernel, taps=taps, stack=stack_taps)

    # TODO(synk): optional bf16 cast of x_flat / w_kern (keep f32 accumulation)
    #             for the memory-bound regime on v6e/v7x if the model tolerates it.
    y_flat = pl.pallas_call(
        kernel,
        out_shape=jax.ShapeDtypeStruct((n, cout_p, out_len), jnp.float32),
        grid_spec=pltpu.PrefetchScalarGridSpec(
            num_scalar_prefetch=0,
            grid=(n, num_tiles),
            in_specs=[
                # main tile
                pl.BlockSpec((1, cin_p, tile), lambda b, t: (b, 0, t)),
                # halo: the t_halo lanes starting at the next tile boundary
                pl.BlockSpec((1, cin_p, t_halo),
                             lambda b, t: (b, 0, (t + 1) * halo_step)),
                w_spec,
                pl.BlockSpec((cout_p, 1), lambda b, t: (0, 0)),
            ],
            out_specs=pl.BlockSpec((1, cout_p, tile), lambda b, t: (b, 0, t)),
        ),
        compiler_params=pltpu.CompilerParams(
            dimension_semantics=("parallel", "parallel"),
            vmem_limit_bytes=48 * 1024 * 1024,
        ),
    )(x_flat, x_flat, w_kern, b)

    # TODO(synk): chained MBCNN layers could consume the padded (Cout_p, h_out1, Wp)
    #             layout directly and skip this slice (saves one output HBM pass).
    y = y_flat[:, :cout, :l_out].reshape(n, cout, h_out1, wp)[:, :, :, :w_out1]
    if stride > 1:
        # TODO(synk): compute only the strided output rows/cols in-kernel (4x MXU/HBM).
        y = y[:, :, ::stride, ::stride]
    return y


if __name__ == "__main__":
    key = jax.random.PRNGKey(0)
    k1, k2, k3, k4, k5 = jax.random.split(key, 5)

    N, Cin, H, W = 2, 4, 16, 16
    Cout = 8
    x = jax.random.normal(k1, (N, Cin, H, W), dtype=jnp.float32)

    def ref_conv_relu(x, w, b, *, strides, pad, dil):
        y = jax.lax.conv_general_dilated(
            x, w, window_strides=strides, padding=((pad, pad), (pad, pad)),
            rhs_dilation=(dil, dil), dimension_numbers=('NCHW', 'OIHW', 'NCHW'))
        if b is not None:
            y = y + b[None, :, None, None]
        return jnp.maximum(y, 0.0)

    w3 = jax.random.normal(k2, (Cout, Cin, 3, 3), dtype=jnp.float32) * 0.1
    b3 = jax.random.normal(k3, (Cout,), dtype=jnp.float32) * 0.1
    w1 = jax.random.normal(k4, (Cout, Cin, 1, 1), dtype=jnp.float32) * 0.1
    b1 = jax.random.normal(k5, (Cout,), dtype=jnp.float32) * 0.1

    # Case 1: kernel=3, 'same', stride=1, dilation=1 (stacked-tap path)
    y = jax.block_until_ready(conv_relu(x, w3, b3))
    assert y.shape == (N, Cout, H, W)
    ref1 = ref_conv_relu(x, w3, b3, strides=(1, 1), pad=1, dil=1)
    np.testing.assert_allclose(np.asarray(y), np.asarray(ref1), rtol=1e-3, atol=1e-3)

    # Case 2: kernel=1, 'same', stride=1, dilation=1
    y = jax.block_until_ready(conv_relu(x, w1, b1))
    assert y.shape == (N, Cout, H, W)
    ref2 = ref_conv_relu(x, w1, b1, strides=(1, 1), pad=0, dil=1)
    np.testing.assert_allclose(np.asarray(y), np.asarray(ref2), rtol=1e-3, atol=1e-3)

    # Case 3: kernel=3, 'same', stride=2, dilation=1
    y = jax.block_until_ready(conv_relu(x, w3, b3, strides=(2, 2)))
    assert y.shape == (N, Cout, H // 2, W // 2)
    ref3 = ref_conv_relu(x, w3, b3, strides=(2, 2), pad=1, dil=1)
    np.testing.assert_allclose(np.asarray(y), np.asarray(ref3), rtol=1e-3, atol=1e-3)

    # Case 4: kernel=3, 'same', stride=1, dilation=2
    y = jax.block_until_ready(conv_relu(x, w3, b3, dilation_rate=2))
    assert y.shape == (N, Cout, H, W)
    ref4 = ref_conv_relu(x, w3, b3, strides=(1, 1), pad=2, dil=2)
    np.testing.assert_allclose(np.asarray(y), np.asarray(ref4), rtol=1e-3, atol=1e-3)

    # Case 5: force the per-tap kernel path (used automatically when Cin_p >= 128)
    y = jax.block_until_ready(conv_relu(x, w3, b3, stack_taps=False))
    np.testing.assert_allclose(np.asarray(y), np.asarray(ref1), rtol=1e-3, atol=1e-3)

    print("KERNEL_OK")
</pallas_src>

<mosaic_0001>
module attributes {stable_mosaic.version = 11 : i64} {
  func.func @_conv_relu_kernel(%arg0: i32, %arg1: i32, %arg2: memref<1x8x384xf32, #tpu.memory_space<vmem>>, %arg3: memref<1x8x128xf32, #tpu.memory_space<vmem>>, %arg4: memref<8x72xf32, #tpu.memory_space<vmem>>, %arg5: memref<8x1xf32, #tpu.memory_space<vmem>>, %arg6: memref<1x8x384xf32, #tpu.memory_space<vmem>>) attributes {dimension_semantics = [#tpu.dimension_semantics<parallel>, #tpu.dimension_semantics<parallel>], iteration_bounds = array<i64: 2, 1>, scalar_prefetch = 0 : i64, scratch_operands = 0 : i64, tpu.core_type = #tpu.core_type<tc>, window_params = [{transform_indices = @transform_0, window_bounds = array<i64: 1, 8, 384>}, {transform_indices = @transform_1, window_bounds = array<i64: 1, 8, 128>}, {pipeline_mode = #tpu.pipeline_mode<synchronous>, transform_indices = @transform_2, window_bounds = array<i64: 8, 72>}, {pipeline_mode = #tpu.pipeline_mode<synchronous>, transform_indices = @transform_3, window_bounds = array<i64: 8, 1>}, {transform_indices = @transform_4, window_bounds = array<i64: 1, 8, 384>}]} {
    %c0 = arith.constant 0 : index
    %c0_0 = arith.constant 0 : index
    %c0_1 = arith.constant 0 : index
    %0 = vector.load %arg2[%c0, %c0_0, %c0_1] : memref<1x8x384xf32, #tpu.memory_space<vmem>>, vector<1x8x384xf32>
    %1 = vector.shape_cast %0 : vector<1x8x384xf32> to vector<8x384xf32>
    %c0_2 = arith.constant 0 : index
    %c0_3 = arith.constant 0 : index
    %c0_4 = arith.constant 0 : index
    %2 = vector.load %arg3[%c0_2, %c0_3, %c0_4] : memref<1x8x128xf32, #tpu.memory_space<vmem>>, vector<1x8x128xf32>
    %3 = vector.shape_cast %2 : vector<1x8x128xf32> to vector<8x128xf32>
    %4 = vector.extract_strided_slice %1 {offsets = [0, 1], sizes = [8, 383], strides = [1, 1]} : vector<8x384xf32> to vector<8x383xf32>
    %5 = vector.extract_strided_slice %3 {offsets = [0, 0], sizes = [8, 1], strides = [1, 1]} : vector<8x128xf32> to vector<8x1xf32>
    %6 = tpu.concatenate %4, %5 in 1 : vector<8x383xf32>, vector<8x1xf32> -> vector<8x384xf32>
    %7 = vector.extract_strided_slice %1 {offsets = [0, 2], sizes = [8, 382], strides = [1, 1]} : vector<8x384xf32> to vector<8x382xf32>
    %8 = vector.extract_strided_slice %3 {offsets = [0, 0], sizes = [8, 2], strides = [1, 1]} : vector<8x128xf32> to vector<8x2xf32>
    %9 = tpu.concatenate %7, %8 in 1 : vector<8x382xf32>, vector<8x2xf32> -> vector<8x384xf32>
    %10 = vector.extract_strided_slice %1 {offsets = [0, 18], sizes = [8, 366], strides = [1, 1]} : vector<8x384xf32> to vector<8x366xf32>
    %11 = vector.extract_strided_slice %3 {offsets = [0, 0], sizes = [8, 18], strides = [1, 1]} : vector<8x128xf32> to vector<8x18xf32>
    %12 = tpu.concatenate %10, %11 in 1 : vector<8x366xf32>, vector<8x18xf32> -> vector<8x384xf32>
    %13 = vector.extract_strided_slice %1 {offsets = [0, 19], sizes = [8, 365], strides = [1, 1]} : vector<8x384xf32> to vector<8x365xf32>
    %14 = vector.extract_strided_slice %3 {offsets = [0, 0], sizes = [8, 19], strides = [1, 1]} : vector<8x128xf32> to vector<8x19xf32>
    %15 = tpu.concatenate %13, %14 in 1 : vector<8x365xf32>, vector<8x19xf32> -> vector<8x384xf32>
    %16 = vector.extract_strided_slice %1 {offsets = [0, 20], sizes = [8, 364], strides = [1, 1]} : vector<8x384xf32> to vector<8x364xf32>
    %17 = vector.extract_strided_slice %3 {offsets = [0, 0], sizes = [8, 20], strides = [1, 1]} : vector<8x128xf32> to vector<8x20xf32>
    %18 = tpu.concatenate %16, %17 in 1 : vector<8x364xf32>, vector<8x20xf32> -> vector<8x384xf32>
    %19 = vector.extract_strided_slice %1 {offsets = [0, 36], sizes = [8, 348], strides = [1, 1]} : vector<8x384xf32> to vector<8x348xf32>
    %20 = vector.extract_strided_slice %3 {offsets = [0, 0], sizes = [8, 36], strides = [1, 1]} : vector<8x128xf32> to vector<8x36xf32>
    %21 = tpu.concatenate %19, %20 in 1 : vector<8x348xf32>, vector<8x36xf32> -> vector<8x384xf32>
    %22 = vector.extract_strided_slice %1 {offsets = [0, 37], sizes = [8, 347], strides = [1, 1]} : vector<8x384xf32> to vector<8x347xf32>
    %23 = vector.extract_strided_slice %3 {offsets = [0, 0], sizes = [8, 37], strides = [1, 1]} : vector<8x128xf32> to vector<8x37xf32>
    %24 = tpu.concatenate %22, %23 in 1 : vector<8x347xf32>, vector<8x37xf32> -> vector<8x384xf32>
    %25 = vector.extract_strided_slice %1 {offsets = [0, 38], sizes = [8, 346], strides = [1, 1]} : vector<8x384xf32> to vector<8x346xf32>
    %26 = vector.extract_strided_slice %3 {offsets = [0, 0], sizes = [8, 38], strides = [1, 1]} : vector<8x128xf32> to vector<8x38xf32>
    %27 = tpu.concatenate %25, %26 in 1 : vector<8x346xf32>, vector<8x38xf32> -> vector<8x384xf32>
    %28 = tpu.concatenate %1, %6, %9, %12, %15, %18, %21, %24, %27 in 0 : vector<8x384xf32>, vector<8x384xf32>, vector<8x384xf32>, vector<8x384xf32>, vector<8x384xf32>, vector<8x384xf32>, vector<8x384xf32>, vector<8x384xf32>, vector<8x384xf32> -> vector<72x384xf32>
    %c0_5 = arith.constant 0 : index
    %c0_6 = arith.constant 0 : index
    %29 = vector.load %arg4[%c0_5, %c0_6] : memref<8x72xf32, #tpu.memory_space<vmem>>, vector<8x72xf32>
    %cst = arith.constant dense<0.000000e+00> : vector<8x384xf32>
    %30 = tpu.matmul %29, %28, %cst {dimension_numbers = #tpu.dot_dimension_numbers<[1], [0], [0], [1], [0, 0, 1, 1], [], []>} : vector<8x72xf32>, vector<72x384xf32>, vector<8x384xf32> -> vector<8x384xf32>
    %c0_7 = arith.constant 0 : index
    %c0_8 = arith.constant 0 : index
    %31 = vector.load %arg5[%c0_7, %c0_8] : memref<8x1xf32, #tpu.memory_space<vmem>>, vector<8x1xf32>
    %32 = vector.broadcast %31 : vector<8x1xf32> to vector<8x384xf32>
    %33 = arith.addf %30, %32 : vector<8x384xf32>
    %cst_9 = arith.constant 0.000000e+00 : f32
    %34 = vector.broadcast %cst_9 : f32 to vector<8x384xf32>
    %35 = arith.maximumf %33, %34 : vector<8x384xf32>
    %c0_10 = arith.constant 0 : index
    %c0_11 = arith.constant 0 : index
    %c0_12 = arith.constant 0 : index
    %36 = vector.load %arg6[%c0_10, %c0_11, %c0_12] : memref<1x8x384xf32, #tpu.memory_space<vmem>>, vector<1x8x384xf32>
    %37 = vector.shape_cast %36 : vector<1x8x384xf32> to vector<8x384xf32>
    %38 = vector.shape_cast %35 : vector<8x384xf32> to vector<1x8x384xf32>
    tpu.vector_store %arg6[%c0_10, %c0_11, %c0_12], %38 {strides = array<i32>} : memref<1x8x384xf32, #tpu.memory_space<vmem>>, vector<1x8x384xf32>,
    return
  }
  func.func @transform_0(%arg0: i32, %arg1: i32) -> (i32, i32, i32) {
    %c0_i32 = arith.constant 0 : i32
    %c0_i32_0 = arith.constant 0 : i32
    return %arg0, %c0_i32, %arg1 : i32, i32, i32
  }
  func.func @transform_1(%arg0: i32, %arg1: i32) -> (i32, i32, i32) {
    %c1_i32 = arith.constant 1 : i32
    %0 = arith.addi %arg1, %c1_i32 : i32
    %c3_i32 = arith.constant 3 : i32
    %1 = arith.muli %0, %c3_i32 : i32
    %c0_i32 = arith.constant 0 : i32
    %c0_i32_0 = arith.constant 0 : i32
    return %arg0, %c0_i32, %1 : i32, i32, i32
  }
  func.func @transform_2(%arg0: i32, %arg1: i32) -> (i32, i32) {
    %c0_i32 = arith.constant 0 : i32
    %c0_i32_0 = arith.constant 0 : i32
    %c0_i32_1 = arith.constant 0 : i32
    return %c0_i32, %c0_i32_0 : i32, i32
  }
  func.func @transform_3(%arg0: i32, %arg1: i32) -> (i32, i32) {
    %c0_i32 = arith.constant 0 : i32
    %c0_i32_0 = arith.constant 0 : i32
    %c0_i32_1 = arith.constant 0 : i32
    return %c0_i32, %c0_i32_0 : i32, i32
  }
  func.func @transform_4(%arg0: i32, %arg1: i32) -> (i32, i32, i32) {
    %c0_i32 = arith.constant 0 : i32
    %c0_i32_0 = arith.constant 0 : i32
    return %arg0, %c0_i32, %arg1 : i32, i32, i32
  }
}

</mosaic_0001>

<bundles_post_ra>
// kernel: tpu_custom_call.1
= control target key start
LH: loop header
LB: loop body
LE: loop exit
PB: predicated region body
PF: predicated region fallthrough
CT: control target
= control target key end

     0   :  { %s1267_s0 = inlined_call_operand.hbm [shape: f32[2,8,512], index: 0, kind: input, shape index: {}]   ;;  %s1268_s1 = inlined_call_operand.hbm [shape: f32[2,8,512], index: 1, kind: input, shape index: {}]   ;;  %s1269_s2 = inlined_call_operand.vmem [shape: f32[8,72], index: 2, kind: input, shape index: {}]   ;;  %s1270_s3 = inlined_call_operand.vmem [shape: f32[8,1], index: 3, kind: input, shape index: {}]   ;;  %s1271_s4 = inlined_call_operand.hbm [shape: f32[2,8,384], index: 4, kind: output, shape index: {}]  }
   0x1   :  { %1272 = sst [smem:[#allocation11_spill]] %s1267_s0 }
   0x2   :  { %9 = vsyncpa [#allocation3], 0 }
   0x3   :  { %11 = vsyncpa [#allocation3 + $0x1], 0 }
   0x4   :  { %12 = vsyncpa [#allocation6], 0 }
   0x5   :  { %14 = vsyncpa [#allocation6 + $0x1], 0 }
   0x6   :  { %15 = vsyncpa [#allocation4], 0 }
   0x7   :  { %17 = vsyncpa [#allocation4 + $0x1], 0  ;;  %s1028_s15 = smov 0   ;;  %s1030_s16 = smov 0  }
   0x8   :  { %s1032_s17 = smov 0   ;;  %s1034_s18 = smov 0  }
   0x9   :  { %s1036_s19 = smov 0   ;;  %s1038_s20 = smov 0  }
   0xa LB: > { %s715_s21 = sadd.s32 4294967295, %s987_s20   ;;  %s716_s22 = sadd.s32 4294967294, %s987_s20   ;;  %s987_s20 = sphi %s1038_s20, %s23_s20   ;;  %s983_s19 = sphi %s1036_s19, %s1285_s19   ;;  %s979_s18 = sphi %s1034_s18, %s1284_s18   ;;  %s975_s17 = sphi %s1032_s17, %s1283_s17   ;;  %s971_s16 = sphi %s1030_s16, %s1282_s16   ;;  %s967_s15 = sphi %s1028_s15, %s1281_s15  }
   0xb   : > { %s35_s23 = sadd.s32 1, %s983_s19  ;;  %s44_s24 = sadd.s32 1, %s975_s17 }
   0xc   : > { %p37_p0 = scmp.ge.s32.totalorder %s35_s23, 2  ;;  %p51_p1 = scmp.ne.s32.totalorder %s975_s17, %s971_s16 }
   0xd   : > { %p52_p2 = scmp.eq.s32.totalorder %s987_s20, 0  ;;  %p57_p3 = scmp.ne.s32.totalorder %s971_s16, %s967_s15 }
   0xe   : > { %s1287_s23 = smov (%p37_p0, %s35_s23), 0  ;;  %p58_p5 = scmp.eq.s32.totalorder %s715_s21, 0 }
   0xf   : > { %p1069_p4 = por %p52_p2, %p51_p1  ;;  %s39_s26 = ssub.s32 %s983_s19, %s1287_s23 }
  0x10   : > { %p157_p6 = scmp.eq.s32.totalorder %s715_s21, 1  ;;  %p42_p7 = scmp.eq.s32.totalorder %s39_s26, 0 }
  0x11   : > { %p1075_p8 = por %p58_p5, %p57_p3  ;;  %p163_p10 = scmp.eq.s32.totalorder %s716_s22, 1 }
  0x12   : > { %p1079_p9 = por %p157_p6, %p51_p1  ;;  %p784_p13 = scmp.lt.s32.totalorder %s987_s20, 2 }
  0x13   : > { %s1084_s29 = scalar_select %p42_p7, %s975_s17, %s44_s24  }
  0x14   : > { %p1086_p11 = por %p163_p10, %p57_p3  ;;  %s1093_s5 = sand.u32 1, %s975_s17  }
  0x15   : > { %s764_s6 = smul.u32 24, %s1093_s5  ;;  %s731_s7 = sshll.u32 %s983_s19, 9 }
  0x16   : > { %p1099_p0 = pnand %p784_p13, %p1069_p4  ;;  %s1278_s0 = sld [smem:[#allocation11_spill]] }
  0x17   : > { %s193_s12 = scalar_lea.vmem [#allocation2], %s764_s6  ;;  %p724_p1 = scmp.ge.s32.totalorder %s987_s20, 1 }
  0x18   : > { %s209_s13 = sshll.u32 %s193_s12, 4  ;;  %s190_s14 = scalar_lea.sflag [#allocation3], %s1093_s5  ;;  %s210_s13 = int_to_ptr.vmem [resolvable:$true] %s209_s13 }
  0x19   : > { %p848_p2 = pneg %p1099_p0  ;;  %s859_s21 = scalar_lea.vmem %s210_s13, 384 }
  0x1a   : > { %p860_p3 = scmp.ne.s32.totalorder %s210_s13, %s859_s21  ;;  %s989_s22 = smov [#allocation2]  }
  0x1b   : > { %s864_s24 = sshll.u32 %s989_s22, 4  ;;  %s865_s24 = int_to_ptr.vmem [resolvable:$false] %s864_s24 }
  0x1c   : > { %s206_s11 = scalar_lea.hbm %s1278_s0, %s731_s7  ;;  %p862_p4 = pnand %p860_p3, %p848_p2 }
  0x1d   : > { %s866_s25 = scalar_lea.vmem %s865_s24, 768  ;;  %p867_p6 = scmp.lt.s32.totalorder %s210_s13, %s865_s24 }
  0x1e   : > { %p863_p5 = pneg %p862_p4  ;;  %p868_p7 = scmp.lt.s32.totalorder %s866_s25, %s859_s21 }
  0x20   : > { %p869_p10 = por %p868_p7, %p867_p6 }
  0x22   : > { %p870_p13 = pnand %p869_p10, %p863_p5 }
  0x24   : > { %873 = shalt.err (!%p870_p13)
}
  0x25   : > { %776 = dma.hbm_to_vmem [thread:$0]  (!%p1099_p0), %s206_s11, 384, %s210_s13, %s190_s14  }
  0x26   : > { %p236_p12 = scmp.lt.s32.totalorder %s987_s20, 3  ;;  %s721_s26 = sshll.u32 %s1093_s5, 3 }
  0x27   : > { %s646_s10 = scalar_lea.hbm %s1268_s1, %s731_s7  ;;  %s220_s22 = scalar_lea.vmem [#allocation5], %s721_s26 }
  0x28   : > { %p1122_p3 = pnand %p724_p1, %p236_p12  ;;  %s647_s21 = scalar_lea.hbm %s646_s10, 384 }
  0x29   : > { %s231_s24 = sshll.u32 %s220_s22, 4  ;;  %s217_s25 = scalar_lea.sflag [#allocation6], %s1093_s5  ;;  %s232_s24 = int_to_ptr.vmem [resolvable:$true] %s231_s24 }
  0x2a   : > { %s887_s0 = scalar_lea.vmem %s232_s24, 128  ;;  %s990_s11 = smov [#allocation5]  }
  0x2b   : > { %p888_p4 = scmp.ne.s32.totalorder %s232_s24, %s887_s0  ;;  %s892_s13 = sshll.u32 %s990_s11, 4  ;;  %s893_s13 = int_to_ptr.vmem [resolvable:$false] %s892_s13 }
  0x2c   : > { %s894_s7 = scalar_lea.vmem %s893_s13, 256  ;;  %p895_p7 = scmp.lt.s32.totalorder %s232_s24, %s893_s13 }
  0x2d   : > { %p890_p5 = pnand %p888_p4, %p848_p2  ;;  %p896_p12 = scmp.lt.s32.totalorder %s894_s7, %s887_s0 }
  0x2f   : > { %p891_p6 = pneg %p890_p5  ;;  %p897_p1 = por %p896_p12, %p895_p7 }
  0x31   : > { %p898_p10 = pnand %p897_p1, %p891_p6 }
  0x33   : > { %901 = shalt.err (!%p898_p10)
}
  0x34   : > { %779 = dma.hbm_to_vmem [thread:$0]  (!%p1099_p0), %s647_s21, 128, %s232_s24, %s217_s25  }
  0x35   : > { %240 = sbr.rel (%p1122_p3) target bundleno = 455 (0x1c7), region = 36  ;;  %s1135_s5 = sand.u32 (!%p1122_p3), 1, %s971_s16  }
  0x36   : > { %s765_s14 = smul.u32 (!%p1122_p3), 24, %s1135_s5  ;;  %s243_s26 = scalar_lea.sflag (!%p1122_p3), [#allocation3], %s1135_s5 }
  0x38   : > { %s246_s0 = scalar_lea.vmem (!%p1122_p3), [#allocation2], %s765_s14 }
  0x3a   : > { %954 = dma.done.wait (%p1075_p8), %s243_s26, 384  }
  0x3b   : > { %956 = vsyncadd (%p1075_p8), %s243_s26, 4294966912  ;;  %s725_s8 = sshll.u32 %s1135_s5, 3  ;;  %s252_s6 = scalar_lea.sflag [#allocation6], %s1135_s5 }
  0x3c   : > { %s255_s9 = scalar_lea.vmem [#allocation5], %s725_s8 }
  0x3d   : > { %958 = dma.done.wait (%p1075_p8), %s252_s6, 128  }
  0x3e   : > { %960 = vsyncadd (%p1075_p8), %s252_s6, 4294967168  ;;  %v1151_v0 = vld [vmem:[%s246_s0 + $0x8] sm:$0xff]  ;;  %v1153_v1 = vld [vmem:[%s246_s0] sm:$0xff]  ;;  %v991_v2 = vmov 0.0   ;;  %s992_s10 = smov 90   ;;  %s993_s27 = smov 91  }
  0x3f   : > { %743 = vmatprep.subr.mxu1 %v991_v2  ;;  %504 = vmatprep.mubr.f32.mxu0 %v991_v2  ;;  %v1159_v3 = vld [vmem:[%s246_s0 + $0x10] sm:$0xff]  ;;  %s994_s12 = smov 92   ;;  %s995_s21 = smov 108   ;;  %vm1000_vm0 = vmmov 0   ;;  %v1001_v5 = vmov 0   ;;  %v430_v6 = vld [vmem:[%s1270_s3] sm:$0xff] }
  0x40   : > { %415 = vrot.lane.b32.xlu0 %v1151_v0, %s992_s10  ;;  %413 = vrot.lane.b32.xlu1 %v1153_v1, %s992_s10  ;;  %v296_v4 = vld [vmem:[%s255_s9] sm:$0xff]  ;;  %s996_s22 = smov 109   ;;  %s997_s24 = smov 110   ;;  %vm419_vm1 = vcmask 736256   ;;  %vm403_vm2 = vcmask 744448   ;;  %vm387_vm3 = vcmask 752640  }
  0x41   : > { %s998_s25 = smov 126   ;;  %s999_s11 = smov 127   ;;  %761 = vmatprep.mubr.msk.f32.mxu1 %vm1000_vm0, %v991_v2  ;;  %845 = vset.pattern.permute.xlu0 %v1001_v5  ;;  %vm371_vm4 = vcmask 883712   ;;  %vm355_vm5 = vcmask 891904   ;;  %vm339_vm6 = vcmask 900096   ;;  %vm323_vm7 = vcmask 1031168  }
  0x42   : > { %vm306_vm8 = vcmask 1039360   ;;  %v429_v59 = vld [vmem:[%s1269_s2] sm:$0xff]  ;;  %vm436_vm9 = vcmask 588800   ;;  %s766_s8 = smul.u32 384, %s979_s18  ;;  %s284_s6 = scalar_lea.vmem [#allocation7], %s765_s14 }
  0x43   : > { %s604_s9 = sshll.u32 %s284_s6, 4  ;;  %s1002_s18 = smov [#allocation7]   ;;  %s605_s9 = int_to_ptr.vmem [resolvable:$true] %s604_s9 }
  0x44   : > { %417 = vrot.lane.b32.xlu0 %v1159_v3, %s992_s10  ;;  %399 = vrot.lane.b32.xlu1 %v1151_v0, %s993_s27  ;;  %s907_s14 = sshll.u32 %s1002_s18, 4  ;;  %s908_s14 = int_to_ptr.vmem [resolvable:$false] %s907_s14 }
  0x45   : > { %p910_p13 = scmp.lt.s32.totalorder %s605_s9, %s908_s14 }
  0x48   : > { %401 = vrot.lane.b32.xlu0 %v1159_v3, %s993_s27  ;;  %397 = vrot.lane.b32.xlu1 %v1153_v1, %s993_s27 }
  0x4c   : > { %425 = vrot.lane.b32.xlu0 %v296_v4, %s992_s10  ;;  %383 = vrot.lane.b32.xlu1 %v1151_v0, %s994_s12 }
  0x50   : > { %385 = vrot.lane.b32.xlu0 %v1159_v3, %s994_s12  ;;  %381 = vrot.lane.b32.xlu1 %v1153_v1, %s994_s12 }
  0x54   : > { %409 = vrot.lane.b32.xlu0 %v296_v4, %s993_s27  ;;  %367 = vrot.lane.b32.xlu1 %v1151_v0, %s995_s21 }
  0x58   : > { %369 = vrot.lane.b32.xlu0 %v1159_v3, %s995_s21  ;;  %365 = vrot.lane.b32.xlu1 %v1153_v1, %s995_s21 }
  0x5c   : > { %393 = vrot.lane.b32.xlu0 %v296_v4, %s994_s12  ;;  %351 = vrot.lane.b32.xlu1 %v1151_v0, %s996_s22  ;;  %s602_s12 = scalar_lea.hbm %s1271_s4, %s766_s8 }
  0x60   : > { %353 = vrot.lane.b32.xlu0 %v1159_v3, %s996_s22  ;;  %349 = vrot.lane.b32.xlu1 %v1153_v1, %s996_s22 }
  0x64   : > { %377 = vrot.lane.b32.xlu0 %v296_v4, %s995_s21  ;;  %335 = vrot.lane.b32.xlu1 %v1151_v0, %s997_s24  ;;  %s588_s21 = scalar_lea.sflag [#allocation4], %s1135_s5 }
  0x68   : > { %337 = vrot.lane.b32.xlu0 %v1159_v3, %s997_s24  ;;  %333 = vrot.lane.b32.xlu1 %v1153_v1, %s997_s24 }
  0x6c   : > { %361 = vrot.lane.b32.xlu0 %v296_v4, %s996_s22  ;;  %319 = vrot.lane.b32.xlu1 %v1151_v0, %s998_s25  ;;  %s903_s22 = scalar_lea.vmem %s605_s9, 384 }
  0x6d   : > { %p904_p8 = scmp.ne.s32.totalorder %s605_s9, %s903_s22 }
  0x6f   : > { %p905_p0 = pnand %p904_p8, %p1079_p9 }
  0x70   : > { %321 = vrot.lane.b32.xlu0 %v1159_v3, %s998_s25  ;;  %317 = vrot.lane.b32.xlu1 %v1153_v1, %s998_s25 }
  0x71   : > { %p906_p2 = pneg %p905_p0 }
  0x74   : > { %345 = vrot.lane.b32.xlu0 %v296_v4, %s997_s24  ;;  %302 = vrot.lane.b32.xlu1 %v1151_v0, %s999_s11  ;;  %s909_s24 = scalar_lea.vmem %s908_s14, 768 }
  0x75   : > { %p911_p3 = scmp.lt.s32.totalorder %s909_s24, %s903_s22 }
  0x77   : > { %p912_p4 = por %p911_p3, %p910_p13 }
  0x78   : > { %304 = vrot.lane.b32.xlu0 %v1159_v3, %s999_s11  ;;  %300 = vrot.lane.b32.xlu1 %v1153_v1, %s999_s11 }
  0x79   : > { %p913_p5 = pnand %p912_p4, %p906_p2 }
  0x7c   : > { %329 = vrot.lane.b32.xlu0 %v296_v4, %s998_s25  ;;  %313 = vrot.lane.b32.xlu1 %v296_v4, %s999_s11 }
  0x80   : > { %433 = vperm.xlu0 %845, %v430_v6  }
  0xb2   : > { %v416_v7 = vpop.permute.xlu0 %415  ;;  %v414_v8 = vpop.permute.xlu1 %413 }
  0xb3   : > { %v420_v12 = vsel %vm419_vm1, %v414_v8, %v416_v7 }
  0xb6   : > { %v418_v9 = vpop.permute.xlu0 %417  ;;  %v400_v10 = vpop.permute.xlu1 %399 }
  0xb7   : > { %v421_v11 = vsel %vm419_vm1, %v416_v7, %v418_v9 }
  0xb8   : > { %454 = vmatprep.subr.mxu0 %v421_v11 }
  0xb9   : > { %455 = vmatpush1.msra.mxu0 %v420_v12 }
  0xba   : > { %v402_v13 = vpop.permute.xlu0 %401  ;;  %v398_v14 = vpop.permute.xlu1 %397 }
  0xbb   : > { %v405_v15 = vsel %vm403_vm2, %v400_v10, %v402_v13  ;;  %v404_v16 = vsel %vm403_vm2, %v398_v14, %v400_v10 }
  0xbc   : > { %456 = vmatprep.subr.mxu0 %v405_v15 }
  0xbd   : > { %457 = vmatpush1.msra.mxu0 %v404_v16 }
  0xbe   : > { %v426_v17 = vpop.permute.xlu0 %425  ;;  %v384_v18 = vpop.permute.xlu1 %383 }
  0xbf   : > { %v428_v19 = vsel %vm419_vm1, %v418_v9, %v426_v17 }
  0xc0   : > { %744 = vmatpush3.msra.mxu1 %v428_v19 }
  0xc1   : > { %745 = vmatprep.subr.mxu1 %v991_v2 }
  0xc2   : > { %v386_v20 = vpop.permute.xlu0 %385  ;;  %v382_v21 = vpop.permute.xlu1 %381 }
  0xc3   : > { %v389_v22 = vsel %vm387_vm3, %v384_v18, %v386_v20  ;;  %v388_v23 = vsel %vm387_vm3, %v382_v21, %v384_v18 }
  0xc4   : > { %458 = vmatprep.subr.mxu0 %v389_v22 }
  0xc5   : > { %459 = vmatpush1.msra.mxu0 %v388_v23 }
  0xc6   : > { %v410_v24 = vpop.permute.xlu0 %409  ;;  %v368_v25 = vpop.permute.xlu1 %367 }
  0xc7   : > { %v412_v26 = vsel %vm403_vm2, %v402_v13, %v410_v24 }
  0xc8   : > { %746 = vmatpush3.msra.mxu1 %v412_v26 }
  0xc9   : > { %747 = vmatprep.subr.mxu1 %v991_v2 }
  0xca   : > { %v370_v27 = vpop.permute.xlu0 %369  ;;  %v366_v28 = vpop.permute.xlu1 %365 }
  0xcb   : > { %v373_v29 = vsel %vm371_vm4, %v368_v25, %v370_v27  ;;  %v372_v30 = vsel %vm371_vm4, %v366_v28, %v368_v25 }
  0xcc   : > { %460 = vmatprep.subr.mxu0 %v373_v29 }
  0xcd   : > { %461 = vmatpush1.msra.mxu0 %v372_v30 }
  0xce   : > { %v394_v31 = vpop.permute.xlu0 %393  ;;  %v352_v32 = vpop.permute.xlu1 %351 }
  0xcf   : > { %v396_v33 = vsel %vm387_vm3, %v386_v20, %v394_v31 }
  0xd0   : > { %748 = vmatpush3.msra.mxu1 %v396_v33 }
  0xd1   : > { %749 = vmatprep.subr.mxu1 %v991_v2 }
  0xd2   : > { %v354_v34 = vpop.permute.xlu0 %353  ;;  %v350_v35 = vpop.permute.xlu1 %349 }
  0xd3   : > { %v357_v36 = vsel %vm355_vm5, %v352_v32, %v354_v34  ;;  %v356_v37 = vsel %vm355_vm5, %v350_v35, %v352_v32 }
  0xd4   : > { %462 = vmatprep.subr.mxu0 %v357_v36 }
  0xd5   : > { %463 = vmatpush1.msra.mxu0 %v356_v37 }
  0xd6   : > { %v378_v38 = vpop.permute.xlu0 %377  ;;  %v336_v39 = vpop.permute.xlu1 %335 }
  0xd7   : > { %v380_v40 = vsel %vm371_vm4, %v370_v27, %v378_v38 }
  0xd8   : > { %750 = vmatpush3.msra.mxu1 %v380_v40 }
  0xd9   : > { %751 = vmatprep.subr.mxu1 %v991_v2 }
  0xda   : > { %v338_v41 = vpop.permute.xlu0 %337  ;;  %v334_v42 = vpop.permute.xlu1 %333 }
  0xdb   : > { %v341_v43 = vsel %vm339_vm6, %v336_v39, %v338_v41  ;;  %v340_v44 = vsel %vm339_vm6, %v334_v42, %v336_v39 }
  0xdc   : > { %464 = vmatprep.subr.mxu0 %v341_v43 }
  0xdd   : > { %465 = vmatpush1.msra.mxu0 %v340_v44 }
  0xde   : > { %v362_v45 = vpop.permute.xlu0 %361  ;;  %v320_v46 = vpop.permute.xlu1 %319 }
  0xdf   : > { %v364_v47 = vsel %vm355_vm5, %v354_v34, %v362_v45 }
  0xe0   : > { %752 = vmatpush3.msra.mxu1 %v364_v47 }
  0xe1   : > { %753 = vmatprep.subr.mxu1 %v991_v2 }
  0xe2   : > { %v322_v48 = vpop.permute.xlu0 %321  ;;  %v318_v49 = vpop.permute.xlu1 %317 }
  0xe3   : > { %v325_v50 = vsel %vm323_vm7, %v320_v46, %v322_v48  ;;  %v324_v51 = vsel %vm323_vm7, %v318_v49, %v320_v46 }
  0xe4   : > { %466 = vmatprep.subr.mxu0 %v325_v50 }
  0xe5   : > { %467 = vmatpush1.msra.mxu0 %v324_v51 }
  0xe6   : > { %v346_v52 = vpop.permute.xlu0 %345  ;;  %v303_v53 = vpop.permute.xlu1 %302 }
  0xe7   : > { %v348_v54 = vsel %vm339_vm6, %v338_v41, %v346_v52 }
  0xe8   : > { %754 = vmatpush3.msra.mxu1 %v348_v54 }
  0xe9   : > { %755 = vmatprep.subr.mxu1 %v991_v2 }
  0xea   : > { %v305_v55 = vpop.permute.xlu0 %304  ;;  %v301_v56 = vpop.permute.xlu1 %300 }
  0xeb   : > { %v308_v57 = vsel %vm306_vm8, %v303_v53, %v305_v55  ;;  %v307_v58 = vsel %vm306_vm8, %v301_v56, %v303_v53 }
  0xec   : > { %468 = vmatprep.subr.mxu0 %v308_v57 }
  0xed   : > { %469 = vmatpush1.msra.mxu0 %v307_v58 }
  0xee   : > { %v330_v60 = vpop.permute.xlu0 %329  ;;  %v314_v61 = vpop.permute.xlu1 %313  ;;  %470 = vmatprep.subr.mxu0 %v1151_v0 }
  0xef   : > { %471 = vmatpush1.msra.mxu0 %v1153_v1  ;;  %v332_v62 = vsel %vm323_vm7, %v322_v48, %v330_v60  ;;  %v316_v63 = vsel %vm306_vm8, %v305_v55, %v314_v61 }
  0xf0   : > { %756 = vmatpush3.msra.mxu1 %v332_v62  ;;  %726 = vmatmul.mubr.msk.f32.vlgmr.msra.gmra.mxu0 %vm436_vm9, %v429_v59 }
  0xf1   : > { %757 = vmatprep.subr.mxu1 %v991_v2 }
  0xf2   : > { %758 = vmatpush3.msra.mxu1 %v316_v63 }
  0xf3   : > { %759 = vmatprep.subr.mxu1 %v991_v2 }
  0xf4   : > { %760 = vmatpush3.msra.mxu1 %v1159_v3 }
  0xf5   : > { %762 = vmatmul.mubr.msk.f32.vlgmr.msra.gmra.mxu1 %vm436_vm9, %v429_v59 }
  0xfb   : > { %v434_v4 = vpop.permute.xlu0 %433 }
 0x1b0   : > { %v506_v0 = vpop.f32.mrf.mxu0 }
 0x1b1   : > { %v507_v5 = vadd.f32 %v506_v0, %v434_v4 }
 0x1b2   : > { %v508_v1 = vpop.f32.mrf.mxu0 }
 0x1b3   : > { %v581_v6 = vmax.f32 %v507_v5, 0.0  ;;  %v509_v7 = vadd.f32 %v508_v1, %v434_v4 }
 0x1b5   : > { %584 = vst [vmem:[%s284_s6] sm:$0xff] %v581_v6  ;;  %v582_v8 = vmax.f32 %v509_v7, 0.0  ;;  %v577_v9 = vpop.f32.mrf.mxu1 }
 0x1b6   : > { %v578_v10 = vadd.f32 %v577_v9, %v434_v4 }
 0x1b7   : > { %585 = vst [vmem:[%s284_s6 + $0x8] sm:$0xff] %v582_v8  ;;  %v763_v2 = vpop.f32.mrf.mxu1 }
 0x1b8   : > { %v583_v3 = vmax.f32 %v578_v10, 0.0 }
 0x1ba   : > { %586 = vst [vmem:[%s284_s6 + $0x10] sm:$0xff] %v583_v3 }
 0x1bb   : > { %916 = shalt.err (!%p913_p5)
}
 0x1bc   : > { %s917_s25 = scalar_lea.hbm %s602_s12, 384  ;;  %s921_s13 = scalar_lea.hbm %s1271_s4, 768 }
 0x1bd   : > { %p918_p6 = scmp.ne.s32.totalorder %s602_s12, %s917_s25  ;;  %p922_p1 = scmp.lt.s32.totalorder %s602_s12, %s1271_s4 }
 0x1be   : > { %p923_p10 = scmp.lt.s32.totalorder %s921_s13, %s917_s25 }
 0x1bf   : > { %p919_p7 = pnand %p918_p6, %p1079_p9 }
 0x1c0   : > { %p924_p8 = por %p923_p10, %p922_p1 }
 0x1c1   : > { %p920_p12 = pneg %p919_p7 }
 0x1c3   : > { %p925_p0 = pnand %p924_p8, %p920_p12 }
 0x1c5   : > { %928 = shalt.err (!%p925_p0)
}
 0x1c6   : > { %771 = dma.vmem_to_hbm [thread:$0]  (%p1079_p9), %s605_s9, 384, %s602_s12, %s588_s21  }
 0x1c7 PF: > { %s616_s0 = sand.u32 1, %s967_s15   ;;  %p1280_p2 = scmp.ge.s32.totalorder %s987_s20, 2 }
 0x1c8   : > { %s617_s8 = scalar_lea.sflag [#allocation4], %s616_s0 }
 0x1c9   : > { %p781_p13 = pnand %p1280_p2, %p1086_p11 }
 0x1cb   : > { %p782_p3 = pneg %p781_p13 }
 0x1cd   : > { %962 = dma.done.wait (%p782_p3), %s617_s8, 384  }
 0x1ce   : > { %964 = vsyncadd (%p782_p3), %s617_s8, 4294966912  ;;  %s23_s20 = sadd.s32 1, %s987_s20   ;;  %s1281_s15 = smov %s971_s16 }
 0x1cf   : > { %p20_p4 = scmp.ge.s32.totalorder %s23_s20, 4   ;;  %s1282_s16 = smov %s975_s17 }
 0x1d0   : > { %s1283_s17 = smov %s1084_s29  ;;  %s1284_s18 = smov %s983_s19 }
 0x1d1   : > { %s1285_s19 = smov %s1287_s23  ;;  %22 = sbr.rel (!%p20_p4) target bundleno = 10 (0xa), region = 94 }
 0x1d6   :  { %622 = vsyncpa [#allocation3], 1 }
 0x1d7   :  { %624 = vsyncpa [#allocation3 + $0x1], 1 }
 0x1d8   :  { %625 = vsyncpa [#allocation6], 1 }
 0x1d9   :  { %627 = vsyncpa [#allocation6 + $0x1], 1 }
 0x1da   :  { %628 = vsyncpa [#allocation4], 1 }
 0x1db   :  { %630 = vsyncpa [#allocation4 + $0x1], 1 }

</bundles_post_ra>
